<compile_context>
chip_gen: v5e
topology: v5e:2x2
jax: 0.10.0
libtpu: 0.0.40
codegen_flags: <defaults>
</compile_context>

<pallas_src>
import functools

import jax
import jax.numpy as jnp
from jax.experimental import pallas as pl
from jax.experimental.pallas import tpu as pltpu


def _mlp_kernel(num_layers, num_concepts, *refs):
    """refs = (x_ref, w1, b1, w2, b2, ..., wL, bL, out_ref)."""
    x_ref = refs[0]
    out_ref = refs[-1]
    wb = refs[1:-1]

    tile_b = x_ref.shape[0]
    x = x_ref[...].astype(jnp.bfloat16)                 # (TILE_B, C, E)

    # Layer 0: concat-over-concepts expressed as a sum of per-concept matmuls
    # (equivalent to reshape(B, C*E) @ W1, but without any relayout).
    w0_ref, b0_ref = wb[0], wb[1]                       # (C, E, H0) bf16, (1, H0) f32
    h = jnp.zeros((tile_b, w0_ref.shape[2]), jnp.float32)
    for c in range(num_concepts):                       # static, small trip count
        h += jnp.dot(x[:, c, :], w0_ref[c],
                     preferred_element_type=jnp.float32)
    h += b0_ref[...]

    # Remaining layers: ReLU between layers, none after the final layer.
    for layer in range(1, num_layers):
        w_ref, b_ref = wb[2 * layer], wb[2 * layer + 1]
        h = jnp.maximum(h, 0.0)
        h = jnp.dot(h.astype(jnp.bfloat16), w_ref[...],
                    preferred_element_type=jnp.float32) + b_ref[...]

    out_ref[...] = h.astype(out_ref.dtype)


def _round_up(n, m):
    return ((n + m - 1) // m) * m


def concat_aggregator_forward(x, weights, biases, *, tile_b=None):
    """x: (B, num_concepts, emb_size); weights[i]: (in, out); biases[i]: (out,).

    Returns logits of shape (B, num_classes) in float32.
    """
    B, C, E = x.shape
    num_layers = len(weights)
    num_classes = weights[-1].shape[-1]
    n_pad = _round_up(num_classes, 128)                 # lane-dense output slab

    # Batch tile: MXU-friendly 256 rows when batch is large, at least 8
    # sublanes for tiny batches; capped at 256 to avoid activation spills.
    if tile_b is None:
        tile_b = 256 if B >= 256 else _round_up(B, 8)
    tile_b = max(8, min(int(tile_b), 256))
    B_pad = _round_up(B, tile_b)
    if B_pad != B:
        x = jnp.pad(x, ((0, B_pad - B), (0, 0), (0, 0)))

    # Parameter operands: bf16 weights (layer 0 split per concept), f32 biases,
    # final layer zero-padded to n_pad output lanes.
    param_ops = []
    for layer, (w, b) in enumerate(zip(weights, biases)):
        w = jnp.asarray(w)
        b = jnp.asarray(b).reshape(1, -1).astype(jnp.float32)
        if layer == num_layers - 1 and w.shape[-1] != n_pad:
            pad = n_pad - w.shape[-1]
            w = jnp.pad(w, ((0, 0), (0, pad)))
            b = jnp.pad(b, ((0, 0), (0, pad)))
        if layer == 0:
            w = w.reshape(C, E, -1)                     # (C, E, H0)
        param_ops.append(w.astype(jnp.bfloat16))
        param_ops.append(b)

    # BlockSpecs: x / out tiled over batch; params full-block, constant index
    # map -> VMEM-resident across grid steps.
    in_specs = [pl.BlockSpec((tile_b, C, E), lambda i: (i, 0, 0))]
    for op in param_ops:
        in_specs.append(pl.BlockSpec(op.shape, lambda i, n=op.ndim: (0,) * n))
    out_spec = pl.BlockSpec((tile_b, n_pad), lambda i: (i, 0))

    # Explicit VMEM budget: double-buffered x/out tiles + resident params
    # (counted x2 to cover per-BlockSpec buffering) + headroom; cap at v7x's
    # 64 MiB physical VMEM.
    vmem_bytes = 2 * tile_b * C * E * x.dtype.itemsize
    vmem_bytes += 2 * tile_b * n_pad * 4
    for op in param_ops:
        vmem_bytes += 2 * op.size * op.dtype.itemsize
    vmem_bytes += 4 << 20
    vmem_limit = int(min(max(vmem_bytes, 32 << 20), 64 << 20))

    kernel = functools.partial(_mlp_kernel, num_layers, C)

    out = pl.pallas_call(
        kernel,
        out_shape=jax.ShapeDtypeStruct((B_pad, n_pad), jnp.float32),
        grid_spec=pltpu.PrefetchScalarGridSpec(
            num_scalar_prefetch=0,
            grid=(B_pad // tile_b,),
            in_specs=in_specs,
            out_specs=out_spec,
        ),
        compiler_params=pltpu.CompilerParams(
            dimension_semantics=("parallel",),
            vmem_limit_bytes=vmem_limit,
        ),
    )(x, *param_ops)

    return out[:B, :num_classes]


def init_mlp_params(key, in_channels, num_layers, num_classes):
    """Deterministic Glorot-ish init; hidden width == in_channels."""
    dims = [in_channels] + [in_channels] * (num_layers - 1) + [num_classes]
    weights, biases = [], []
    for i in range(num_layers):
        key, wk, bk = jax.random.split(key, 3)
        fan_in, fan_out = dims[i], dims[i + 1]
        scale = 1.0 / jnp.sqrt(jnp.float32(fan_in))
        weights.append(jax.random.normal(wk, (fan_in, fan_out), jnp.float32) * scale)
        biases.append(jax.random.normal(bk, (fan_out,), jnp.float32) * 0.01)
    return weights, biases


def reference_forward(x, weights, biases):
    B = x.shape[0]
    h = x.reshape(B, -1).astype(jnp.float32)
    for i, (w, b) in enumerate(zip(weights, biases)):
        h = h @ w.astype(jnp.float32) + b.astype(jnp.float32)
        if i < len(weights) - 1:
            h = jnp.maximum(h, 0.0)
    return h


if __name__ == "__main__":
    # Small, module-consistent shapes.
    batch_size = 2
    num_concepts = 4
    emb_size = 32
    mlp_num_layers = 2
    num_classes = 8
    in_channels = emb_size * num_concepts  # 128

    key = jax.random.PRNGKey(0)
    key, xk = jax.random.split(key)
    x = jax.random.normal(xk, (batch_size, num_concepts, emb_size), jnp.float32)

    weights, biases = init_mlp_params(key, in_channels, mlp_num_layers, num_classes)
    # Weights are stored / fed in bf16 (half the DMA bytes, bf16 MXU path);
    # the f32 reference uses the same bf16 weights upcast to f32, so the only
    # numerical delta is bf16 rounding of the matmul activations.
    weights = [w.astype(jnp.bfloat16) for w in weights]

    out = jax.block_until_ready(concat_aggregator_forward(x, weights, biases))
    ref = reference_forward(x, weights, biases)
    assert out.shape == (batch_size, num_classes)
    assert jnp.allclose(out, ref, atol=5e-2, rtol=5e-2), "mismatch (small batch)"

    # Second check exercises the multi-tile batch grid + tail padding path.
    key, xk2 = jax.random.split(key)
    x2 = jax.random.normal(xk2, (300, num_concepts, emb_size), jnp.float32)
    out2 = jax.block_until_ready(concat_aggregator_forward(x2, weights, biases))
    ref2 = reference_forward(x2, weights, biases)
    assert out2.shape == (300, num_classes)
    assert jnp.allclose(out2, ref2, atol=5e-2, rtol=5e-2), "mismatch (tiled batch)"

    print("KERNEL_OK")
</pallas_src>

<mosaic_0001>
module attributes {stable_mosaic.version = 11 : i64} {
  func.func @_mlp_kernel(%arg0: i32, %arg1: memref<8x4x32xf32, #tpu.memory_space<vmem>>, %arg2: memref<4x32x128xbf16, #tpu.memory_space<vmem>>, %arg3: memref<1x128xf32, #tpu.memory_space<vmem>>, %arg4: memref<128x128xbf16, #tpu.memory_space<vmem>>, %arg5: memref<1x128xf32, #tpu.memory_space<vmem>>, %arg6: memref<8x128xf32, #tpu.memory_space<vmem>>) attributes {dimension_semantics = [#tpu.dimension_semantics<parallel>], iteration_bounds = array<i64: 1>, scalar_prefetch = 0 : i64, scratch_operands = 0 : i64, tpu.core_type = #tpu.core_type<tc>, window_params = [{transform_indices = @transform_0, window_bounds = array<i64: 8, 4, 32>}, {pipeline_mode = #tpu.pipeline_mode<synchronous>, transform_indices = @transform_1, window_bounds = array<i64: 4, 32, 128>}, {pipeline_mode = #tpu.pipeline_mode<synchronous>, transform_indices = @transform_2, window_bounds = array<i64: 1, 128>}, {pipeline_mode = #tpu.pipeline_mode<synchronous>, transform_indices = @transform_3, window_bounds = array<i64: 128, 128>}, {pipeline_mode = #tpu.pipeline_mode<synchronous>, transform_indices = @transform_4, window_bounds = array<i64: 1, 128>}, {transform_indices = @transform_5, window_bounds = array<i64: 8, 128>}]} {
    %c0 = arith.constant 0 : index
    %c0_0 = arith.constant 0 : index
    %c0_1 = arith.constant 0 : index
    %0 = vector.load %arg1[%c0, %c0_0, %c0_1] : memref<8x4x32xf32, #tpu.memory_space<vmem>>, vector<8x4x32xf32>
    %1 = arith.truncf %0 : vector<8x4x32xf32> to vector<8x4x32xbf16>
    %cst = arith.constant 0.000000e+00 : f32
    %2 = vector.broadcast %cst : f32 to vector<8x128xf32>
    %3 = vector.extract_strided_slice %1 {offsets = [0, 0, 0], sizes = [8, 1, 32], strides = [1, 1, 1]} : vector<8x4x32xbf16> to vector<8x1x32xbf16>
    %4 = vector.shape_cast %3 : vector<8x1x32xbf16> to vector<8x32xbf16>
    %c0_2 = arith.constant 0 : index
    %c0_3 = arith.constant 0 : index
    %c0_4 = arith.constant 0 : index
    %5 = vector.load %arg2[%c0_2, %c0_3, %c0_4] : memref<4x32x128xbf16, #tpu.memory_space<vmem>>, vector<1x32x128xbf16>
    %6 = vector.shape_cast %5 : vector<1x32x128xbf16> to vector<32x128xbf16>
    %cst_5 = arith.constant dense<0.000000e+00> : vector<8x128xf32>
    %7 = tpu.matmul %4, %6, %cst_5 {dimension_numbers = #tpu.dot_dimension_numbers<[1], [0], [0], [1], [0, 0, 1, 1], [], []>} : vector<8x32xbf16>, vector<32x128xbf16>, vector<8x128xf32> -> vector<8x128xf32>
    %8 = arith.addf %2, %7 : vector<8x128xf32>
    %9 = vector.extract_strided_slice %1 {offsets = [0, 1, 0], sizes = [8, 1, 32], strides = [1, 1, 1]} : vector<8x4x32xbf16> to vector<8x1x32xbf16>
    %10 = vector.shape_cast %9 : vector<8x1x32xbf16> to vector<8x32xbf16>
    %c1 = arith.constant 1 : index
    %c0_6 = arith.constant 0 : index
    %c0_7 = arith.constant 0 : index
    %11 = vector.load %arg2[%c1, %c0_6, %c0_7] : memref<4x32x128xbf16, #tpu.memory_space<vmem>>, vector<1x32x128xbf16>
    %12 = vector.shape_cast %11 : vector<1x32x128xbf16> to vector<32x128xbf16>
    %cst_8 = arith.constant dense<0.000000e+00> : vector<8x128xf32>
    %13 = tpu.matmul %10, %12, %cst_8 {dimension_numbers = #tpu.dot_dimension_numbers<[1], [0], [0], [1], [0, 0, 1, 1], [], []>} : vector<8x32xbf16>, vector<32x128xbf16>, vector<8x128xf32> -> vector<8x128xf32>
    %14 = arith.addf %8, %13 : vector<8x128xf32>
    %15 = vector.extract_strided_slice %1 {offsets = [0, 2, 0], sizes = [8, 1, 32], strides = [1, 1, 1]} : vector<8x4x32xbf16> to vector<8x1x32xbf16>
    %16 = vector.shape_cast %15 : vector<8x1x32xbf16> to vector<8x32xbf16>
    %c2 = arith.constant 2 : index
    %c0_9 = arith.constant 0 : index
    %c0_10 = arith.constant 0 : index
    %17 = vector.load %arg2[%c2, %c0_9, %c0_10] : memref<4x32x128xbf16, #tpu.memory_space<vmem>>, vector<1x32x128xbf16>
    %18 = vector.shape_cast %17 : vector<1x32x128xbf16> to vector<32x128xbf16>
    %cst_11 = arith.constant dense<0.000000e+00> : vector<8x128xf32>
    %19 = tpu.matmul %16, %18, %cst_11 {dimension_numbers = #tpu.dot_dimension_numbers<[1], [0], [0], [1], [0, 0, 1, 1], [], []>} : vector<8x32xbf16>, vector<32x128xbf16>, vector<8x128xf32> -> vector<8x128xf32>
    %20 = arith.addf %14, %19 : vector<8x128xf32>
    %21 = vector.extract_strided_slice %1 {offsets = [0, 3, 0], sizes = [8, 1, 32], strides = [1, 1, 1]} : vector<8x4x32xbf16> to vector<8x1x32xbf16>
    %22 = vector.shape_cast %21 : vector<8x1x32xbf16> to vector<8x32xbf16>
    %c3 = arith.constant 3 : index
    %c0_12 = arith.constant 0 : index
    %c0_13 = arith.constant 0 : index
    %23 = vector.load %arg2[%c3, %c0_12, %c0_13] : memref<4x32x128xbf16, #tpu.memory_space<vmem>>, vector<1x32x128xbf16>
    %24 = vector.shape_cast %23 : vector<1x32x128xbf16> to vector<32x128xbf16>
    %cst_14 = arith.constant dense<0.000000e+00> : vector<8x128xf32>
    %25 = tpu.matmul %22, %24, %cst_14 {dimension_numbers = #tpu.dot_dimension_numbers<[1], [0], [0], [1], [0, 0, 1, 1], [], []>} : vector<8x32xbf16>, vector<32x128xbf16>, vector<8x128xf32> -> vector<8x128xf32>
    %26 = arith.addf %20, %25 : vector<8x128xf32>
    %c0_15 = arith.constant 0 : index
    %c0_16 = arith.constant 0 : index
    %27 = vector.load %arg3[%c0_15, %c0_16] : memref<1x128xf32, #tpu.memory_space<vmem>>, vector<1x128xf32>
    %28 = vector.broadcast %27 : vector<1x128xf32> to vector<8x128xf32>
    %29 = arith.addf %26, %28 : vector<8x128xf32>
    %cst_17 = arith.constant 0.000000e+00 : f32
    %30 = vector.broadcast %cst_17 : f32 to vector<8x128xf32>
    %31 = arith.maximumf %29, %30 : vector<8x128xf32>
    %32 = arith.truncf %31 : vector<8x128xf32> to vector<8x128xbf16>
    %c0_18 = arith.constant 0 : index
    %c0_19 = arith.constant 0 : index
    %33 = vector.load %arg4[%c0_18, %c0_19] : memref<128x128xbf16, #tpu.memory_space<vmem>>, vector<128x128xbf16>
    %cst_20 = arith.constant dense<0.000000e+00> : vector<8x128xf32>
    %34 = tpu.matmul %32, %33, %cst_20 {dimension_numbers = #tpu.dot_dimension_numbers<[1], [0], [0], [1], [0, 0, 1, 1], [], []>} : vector<8x128xbf16>, vector<128x128xbf16>, vector<8x128xf32> -> vector<8x128xf32>
    %c0_21 = arith.constant 0 : index
    %c0_22 = arith.constant 0 : index
    %35 = vector.load %arg5[%c0_21, %c0_22] : memref<1x128xf32, #tpu.memory_space<vmem>>, vector<1x128xf32>
    %36 = vector.broadcast %35 : vector<1x128xf32> to vector<8x128xf32>
    %37 = arith.addf %34, %36 : vector<8x128xf32>
    %c0_23 = arith.constant 0 : index
    %c0_24 = arith.constant 0 : index
    %38 = vector.load %arg6[%c0_23, %c0_24] : memref<8x128xf32, #tpu.memory_space<vmem>>, vector<8x128xf32>
    tpu.vector_store %arg6[%c0_23, %c0_24], %37 {strides = array<i32>} : memref<8x128xf32, #tpu.memory_space<vmem>>, vector<8x128xf32>,
    return
  }
  func.func @transform_0(%arg0: i32) -> (i32, i32, i32) {
    %c0_i32 = arith.constant 0 : i32
    %c0_i32_0 = arith.constant 0 : i32
    %c0_i32_1 = arith.constant 0 : i32
    return %arg0, %c0_i32, %c0_i32_0 : i32, i32, i32
  }
  func.func @transform_1(%arg0: i32) -> (i32, i32, i32) {
    %c0_i32 = arith.constant 0 : i32
    %c0_i32_0 = arith.constant 0 : i32
    %c0_i32_1 = arith.constant 0 : i32
    %c0_i32_2 = arith.constant 0 : i32
    return %c0_i32, %c0_i32_0, %c0_i32_1 : i32, i32, i32
  }
  func.func @transform_2(%arg0: i32) -> (i32, i32) {
    %c0_i32 = arith.constant 0 : i32
    %c0_i32_0 = arith.constant 0 : i32
    %c0_i32_1 = arith.constant 0 : i32
    return %c0_i32, %c0_i32_0 : i32, i32
  }
  func.func @transform_3(%arg0: i32) -> (i32, i32) {
    %c0_i32 = arith.constant 0 : i32
    %c0_i32_0 = arith.constant 0 : i32
    %c0_i32_1 = arith.constant 0 : i32
    return %c0_i32, %c0_i32_0 : i32, i32
  }
  func.func @transform_4(%arg0: i32) -> (i32, i32) {
    %c0_i32 = arith.constant 0 : i32
    %c0_i32_0 = arith.constant 0 : i32
    %c0_i32_1 = arith.constant 0 : i32
    return %c0_i32, %c0_i32_0 : i32, i32
  }
  func.func @transform_5(%arg0: i32) -> (i32, i32) {
    %c0_i32 = arith.constant 0 : i32
    %c0_i32_0 = arith.constant 0 : i32
    return %arg0, %c0_i32 : i32, i32
  }
}

</mosaic_0001>

<bundles_post_ra>
// kernel: tpu_custom_call.1
= control target key start
LH: loop header
LB: loop body
LE: loop exit
PB: predicated region body
PF: predicated region fallthrough
CT: control target
= control target key end

     0   :  { %10 = vsyncpa [#allocation3], 0  ;;  %s761_s0 = inlined_call_operand.hbm [shape: f32[8,4,32], index: 0, kind: input, shape index: {}]   ;;  %s762_s1 = inlined_call_operand.hbm [shape: bf16[4,32,128], index: 1, kind: input, shape index: {}]   ;;  %s763_s2 = inlined_call_operand.vmem [shape: f32[1,128], index: 2, kind: input, shape index: {}]   ;;  %s764_s3 = inlined_call_operand.hbm [shape: bf16[128,128], index: 3, kind: input, shape index: {}]   ;;  %s765_s4 = inlined_call_operand.vmem [shape: f32[1,128], index: 4, kind: input, shape index: {}]   ;;  %s766_s5 = inlined_call_operand.hbm [shape: f32[8,128], index: 5, kind: output, shape index: {}]  }
   0x1   :  { %11 = vsyncpa [#allocation6], 0 }
   0x2   :  { %12 = vsyncpa [#allocation4], 0  ;;  %s30_s20 = sshll.u32 %s762_s1, 4  ;;  %s627_s21 = smov [#allocation5]   ;;  %s31_s20 = int_to_ptr.hbm [resolvable:$true] %s30_s20 }
   0x3   :  { %s32_s22 = sshll.u32 %s627_s21, 4  ;;  %s17_s25 = sshll.u32 %s761_s0, 4  ;;  %s33_s22 = int_to_ptr.vmem [resolvable:$true] %s32_s22  ;;  %s18_s25 = int_to_ptr.hbm [resolvable:$true] %s17_s25 }
   0x4   :  { %s628_s26 = smov 64   ;;  %s629_s27 = smov 4  }
   0x5   :  { %38 = dma.hbm_to_vmem [thread:$0]  %s31_s20, 1024, %s33_s22, [#allocation6], %s628_s26, %s628_s26, %s629_s27  }
   0x6   :  { %s630_s28 = smov [#allocation2]   ;;  %s45_s7 = sshll.u32 %s764_s3, 4  ;;  %s46_s7 = int_to_ptr.hbm [resolvable:$true] %s45_s7 }
   0x7   :  { %s19_s29 = sshll.u32 %s630_s28, 4  ;;  %s631_s1 = smov [#allocation7]   ;;  %s20_s29 = int_to_ptr.vmem [resolvable:$true] %s19_s29 }
   0x8   :  { %25 = dma.hbm_to_vmem [thread:$0]  %s18_s25, 512, %s20_s29, [#allocation3], %s628_s26, %s628_s26, %s629_s27  }
   0x9   :  { %s47_s8 = sshll.u32 %s631_s1, 4  ;;  %s48_s8 = int_to_ptr.vmem [resolvable:$true] %s47_s8 }
   0xa   :  { %53 = dma.hbm_to_vmem [thread:$0]  %s46_s7, 1024, %s48_s8, [#allocation6], %s628_s26, %s628_s26, %s629_s27  }
   0xb   :  { %621 = dma.done.wait [#allocation3], 512  }
   0xc   :  { %622 = vsyncadd [#allocation3], 4294966784 }
   0xd   :  { %623 = dma.done.wait [#allocation6], 2048  }
   0xe   :  { %624 = vsyncadd [#allocation6], 4294965248  ;;  %v504_v0 = vld [vmem:[#allocation5 + $0x18] sm:$0xff]  ;;  %v503_v1 = vld [vmem:[#allocation5 + $0x10] sm:$0xff]  ;;  %vm127_vm0 = vcmask 1041409   ;;  %vm130_vm1 = vcmask 1042434  }
   0xf   :  { %v506_v2 = vld [vmem:[#allocation5 + $0x28] sm:$0xff]  ;;  %v508_v3 = vld [vmem:[#allocation5 + $0x38] sm:$0xff]  ;;  %v69_v4 = vld [vmem:[#allocation2] sm:$0xf]  ;;  %vm133_vm2 = vcmask 1043459   ;;  %170 = vmatpush.bf16.msra.mxu1 %v504_v0  ;;  %vm136_vm3 = vcmask 1044484  }
  0x10   :  { %v70_v5 = vld [vmem:[#allocation2 + $0x4] sm:$0xf]  ;;  %261 = vmatpush.bf16.msra.mxu2 %v506_v2  ;;  %v71_v6 = vld [vmem:[#allocation2 + $0x8] sm:$0xf]  ;;  %v72_v7 = vld [vmem:[#allocation2 + $0xc] sm:$0xf]  ;;  %v77_v9 = vpack.c.bf16 %v69_v4, %v69_v4  ;;  %310 = vmatpush.bf16.msra.mxu3 %v508_v3 }
  0x11   :  { %v73_v8 = vld [vmem:[#allocation2 + $0x10] sm:$0xf]  ;;  %v78_v10 = vpack.c.bf16 %v70_v5, %v70_v5  ;;  %v74_v11 = vld [vmem:[#allocation2 + $0x14] sm:$0xf]  ;;  %v75_v12 = vld [vmem:[#allocation2 + $0x18] sm:$0xf]  ;;  %v79_v14 = vpack.c.bf16 %v71_v6, %v71_v6  ;;  %v80_v15 = vpack.c.bf16 %v72_v7, %v72_v7 }
  0x12   :  { %v76_v13 = vld [vmem:[#allocation2 + $0x1c] sm:$0xf]  ;;  %v81_v16 = vpack.c.bf16 %v73_v8, %v73_v8  ;;  %vm139_vm4 = vcmask 1045509   ;;  %v82_v17 = vpack.c.bf16 %v74_v11, %v74_v11  ;;  %v83_v18 = vpack.c.bf16 %v75_v12, %v75_v12  ;;  %v502_v21 = vld [vmem:[#allocation5 + $0x8] sm:$0xff]  ;;  %v505_v22 = vld [vmem:[#allocation5 + $0x20] sm:$0xff]  ;;  %s632_s11 = smov [#allocation8]  }
  0x13   :  { %v84_v19 = vpack.c.bf16 %v76_v13, %v76_v13  ;;  %v102_v20 = vunpack.c.l.b16 %v77_v9  ;;  %vm142_vm5 = vcmask 1046534   ;;  %v507_v23 = vld [vmem:[#allocation5 + $0x30] sm:$0xff]  ;;  %v103_v24 = vunpack.c.l.b16 %v78_v10  ;;  %v516_v28 = vld [vmem:[#allocation7 + $0x38] sm:$0xff]  ;;  %171 = vmatpush.bf16.msra.mxu1 %v503_v1  ;;  %v501_v37 = vld [vmem:[#allocation5] sm:$0xff]  ;;  %s412_s12 = sshll.u32 %s632_s11, 4  ;;  %s414_s15 = sshll.u32 %s766_s5, 4  ;;  %s413_s12 = int_to_ptr.vmem [resolvable:$true] %s412_s12  ;;  %s415_s15 = int_to_ptr.hbm [resolvable:$true] %s414_s15 }
  0x14   :  { %v104_v25 = vunpack.c.l.b16 %v79_v14  ;;  %v105_v26 = vunpack.c.l.b16 %v80_v15  ;;  %v106_v27 = vunpack.c.l.b16 %v81_v16  ;;  %vm145_vm6 = vcmask 1047559   ;;  %262 = vmatpush.bf16.msra.mxu2 %v505_v22  ;;  %311 = vmatpush.bf16.msra.mxu3 %v507_v23 }
  0x15   :  { %v107_v29 = vunpack.c.l.b16 %v82_v17  ;;  %v108_v30 = vunpack.c.l.b16 %v83_v18  ;;  %v109_v31 = vunpack.c.l.b16 %v84_v19  ;;  %v672_v32 = vunpack.i.l.s16 %v102_v20  ;;  %393 = vmatpush.bf16.msra.mxu0 %v516_v28 }
  0x16   :  { %v674_v33 = vunpack.i.l.s16 %v103_v24  ;;  %v676_v34 = vunpack.i.l.s16 %v104_v25  ;;  %v678_v35 = vunpack.i.l.s16 %v105_v26  ;;  %v680_v36 = vunpack.i.l.s16 %v106_v27 }
  0x17   :  { %213 = vmatpush.bf16.msrb.mxu1 %v502_v21  ;;  %v682_v38 = vunpack.i.l.s16 %v107_v29  ;;  %v684_v39 = vunpack.i.l.s16 %v108_v30  ;;  %v686_v40 = vunpack.i.l.s16 %v109_v31  ;;  %v126_v41 = vrot.slane %v672_v32, 1 }
  0x18   :  { %vm160_vm7 = vcmask 261120   ;;  %v129_v42 = vrot.slane %v676_v34, 7  ;;  %v132_v43 = vrot.slane %v678_v35, 6  ;;  %v135_v44 = vrot.slane %v680_v36, 5 }
  0x19   :  { %v225_v45 = vrot.slane %v672_v32, 2  ;;  %v128_v46 = vsel %vm127_vm0, %v674_v33, %v126_v41  ;;  %v138_v47 = vrot.slane %v682_v38, 4  ;;  %v141_v48 = vrot.slane %v684_v39, 3  ;;  %v512_v41 = vld [vmem:[#allocation7 + $0x18] sm:$0xff] }
  0x1a   :  { %v144_v49 = vrot.slane %v686_v40, 2  ;;  %v131_v50 = vsel %vm130_vm1, %v129_v42, %v128_v46  ;;  %v226_v51 = vrot.slane %v674_v33, 1  ;;  %v229_v52 = vrot.slane %v678_v35, 7  ;;  %v511_v42 = vld [vmem:[#allocation7 + $0x10] sm:$0xff] }
  0x1b   :  { %v231_v53 = vrot.slane %v680_v36, 6  ;;  %214 = vmatpush.bf16.msrb.mxu1 %v501_v37  ;;  %v134_v54 = vsel %vm133_vm2, %v132_v43, %v131_v50  ;;  %v233_v55 = vrot.slane %v682_v38, 5  ;;  %v235_v56 = vrot.slane %v684_v39, 4  ;;  %v515_v37 = vld [vmem:[#allocation7 + $0x30] sm:$0xff]  ;;  %v510_v43 = vld [vmem:[#allocation7 + $0x8] sm:$0xff] }
  0x1c   :  { %v237_v57 = vrot.slane %v686_v40, 3  ;;  %v137_v58 = vsel %vm136_vm3, %v135_v44, %v134_v54  ;;  %v227_v59 = vsel %vm127_vm0, %v226_v51, %v225_v45  ;;  %v274_v60 = vrot.slane %v672_v32, 3  ;;  %394 = vmatpush.bf16.msra.mxu0 %v515_v37 }
  0x1d   :  { %v275_v61 = vrot.slane %v674_v33, 2  ;;  %v140_v62 = vsel %vm139_vm4, %v138_v47, %v137_v58  ;;  %v228_v63 = vsel %vm130_vm1, %v676_v34, %v227_v59  ;;  %v277_v0 = vrot.slane %v676_v34, 1  ;;  %v524_v59 = vld [vmem:[%s765_s4] ss:$0 sm:$0xff] }
  0x1e   :  { %v280_v1 = vrot.slane %v680_v36, 7  ;;  %v143_v2 = vsel %vm142_vm5, %v141_v48, %v140_v62  ;;  %v230_v3 = vsel %vm133_vm2, %v229_v52, %v228_v63  ;;  %v282_v5 = vrot.slane %v682_v38, 6 }
  0x1f   :  { %v276_v4 = vsel %vm127_vm0, %v275_v61, %v274_v60  ;;  %v146_v6 = vsel %vm145_vm6, %v144_v49, %v143_v2  ;;  %v232_v7 = vsel %vm136_vm3, %v231_v53, %v230_v3  ;;  %v284_v9 = vrot.slane %v684_v39, 5  ;;  %v523_v53 = vld [vmem:[%s763_s2] ss:$0 sm:$0xff] }
  0x20   :  { %v278_v8 = vsel %vm130_vm1, %v277_v0, %v276_v4  ;;  %v147_v10 = vpack.c.b16 %v146_v6, %v146_v6  ;;  %v234_v11 = vsel %vm139_vm4, %v233_v55, %v232_v7  ;;  %v286_v13 = vrot.slane %v686_v40, 4 }
  0x21   :  { %v279_v12 = vsel %vm133_vm2, %v678_v35, %v278_v8  ;;  %v236_v14 = vsel %vm142_vm5, %v235_v56, %v234_v11  ;;  %v177_v16 = vrot.slane %v674_v33, 7  ;;  %v179_v17 = vrot.slane %v676_v34, 6 }
  0x22   :  { %v281_v15 = vsel %vm136_vm3, %v280_v1, %v279_v12  ;;  %441 = vmatmul.msk.bf16.vlgmr.msra.gmra.mxu1 %vm160_vm7, %v147_v10  ;;  %v238_v18 = vsel %vm145_vm6, %v237_v57, %v236_v14  ;;  %v181_v20 = vrot.slane %v678_v35, 5  ;;  %v183_v21 = vrot.slane %v680_v36, 4 }
  0x23   :  { %v283_v19 = vsel %vm139_vm4, %v282_v5, %v281_v15  ;;  %v239_v22 = vpack.c.b16 %v238_v18, %v238_v18  ;;  %v178_v24 = vsel %vm127_vm0, %v177_v16, %v672_v32  ;;  %v185_v25 = vrot.slane %v682_v38, 3  ;;  %v514_v38 = vld [vmem:[#allocation7 + $0x28] sm:$0xff] }
  0x24   :  { %v285_v23 = vsel %vm142_vm5, %v284_v9, %v283_v19  ;;  %v180_v27 = vsel %vm130_vm1, %v179_v17, %v178_v24  ;;  %v187_v28 = vrot.slane %v684_v39, 2  ;;  %v189_v32 = vrot.slane %v686_v40, 1  ;;  %395 = vmatpush.bf16.msra.mxu0 %v514_v38  ;;  %v513_v39 = vld [vmem:[#allocation7 + $0x20] sm:$0xff] }
  0x25   :  { %v287_v26 = vsel %vm145_vm6, %v286_v13, %v285_v23  ;;  %459 = vmatmul.msk.bf16.vlgmr.msra.gmra.mxu2 %vm160_vm7, %v239_v22  ;;  %v182_v30 = vsel %vm133_vm2, %v181_v20, %v180_v27  ;;  %v509_v40 = vld [vmem:[#allocation7] sm:$0xff] }
  0x26   :  { %v288_v29 = vpack.c.b16 %v287_v26, %v287_v26  ;;  %v184_v31 = vsel %vm136_vm3, %v183_v21, %v182_v30 }
  0x27   :  { %v186_v33 = vsel %vm139_vm4, %v185_v25, %v184_v31 }
  0x28   :  { %468 = vmatmul.msk.bf16.vlgmr.msra.gmra.mxu3 %vm160_vm7, %v288_v29  ;;  %v188_v34 = vsel %vm142_vm5, %v187_v28, %v186_v33  ;;  %396 = vmatpush.bf16.msra.mxu0 %v513_v39 }
  0x29   :  { %v190_v35 = vsel %vm145_vm6, %v189_v32, %v188_v34 }
  0x2a   :  { %v191_v36 = vpack.c.b16 %v190_v35, %v190_v35 }
  0x2c   :  { %397 = vmatpush.bf16.msra.mxu0 %v512_v41 }
  0x30   :  { %398 = vmatpush.bf16.msra.mxu0 %v511_v42 }
  0x32   :  { %450 = vmatmul.msk.bf16.vlgmr.msrb.gmra.mxu1 %vm160_vm7, %v191_v36 }
  0x34   :  { %399 = vmatpush.bf16.msra.mxu0 %v510_v43 }
  0x38   :  { %400 = vmatpush.bf16.msra.mxu0 %v509_v40 }
  0x9f   :  { %v173_v44 = vpop.f32.mrf.mxu1 }
  0xa7   :  { %v175_v45 = vpop.f32.mrf.mxu1 }
  0xa8   :  { %v264_v46 = vpop.f32.mrf.mxu2 }
  0xab   :  { %v313_v47 = vpop.f32.mrf.mxu3 }
  0xaf   :  { %v216_v48 = vpop.f32.mrf.mxu1 }
  0xb0   :  { %v217_v49 = vadd.f32 %v216_v48, %v173_v44  ;;  %v266_v50 = vpop.f32.mrf.mxu2 }
  0xb2   :  { %v268_v51 = vadd.f32 %v264_v46, %v217_v49 }
  0xb3   :  { %v315_v52 = vpop.f32.mrf.mxu3 }
  0xb4   :  { %v317_v54 = vadd.f32 %v313_v47, %v268_v51 }
  0xb6   :  { %v322_v55 = vadd.f32 %v523_v53, %v317_v54 }
  0xb7   :  { %v218_v56 = vpop.f32.mrf.mxu1 }
  0xb8   :  { %v323_v57 = vmax.f32 %v322_v55, 0.0 }
  0xba   :  { %v324_v58 = vpack.c.bf16 %v323_v57, %v323_v57 }
  0xbc   :  { %401 = vmatmul.bf16.vlgmr.msra.gmra.mxu0 %v324_v58 }
 0x139   :  { %v402_v60 = vpop.f32.mrf.mxu0 }
 0x13a   :  { %v403_v61 = vadd.f32 %v524_v59, %v402_v60 }
 0x13c   :  { %406 = vst [vmem:[#allocation8] sm:$0xff] %v403_v61 }
 0x13d   :  { %417 = dma.vmem_to_hbm [thread:$0]  %s413_s12, 128, %s415_s15, [#allocation4]  }
 0x141   :  { %v404_v62 = vpop.f32.mrf.mxu0 }
 0x142   :  { %625 = dma.done.wait [#allocation4], 128  }
 0x143   :  { %626 = vsyncadd [#allocation4], 4294967168 }
 0x144   :  { %422 = vsyncpa [#allocation3], 1 }
 0x145   :  { %423 = vsyncpa [#allocation6], 1 }
 0x146   :  { %424 = vsyncpa [#allocation4], 1 }

</bundles_post_ra>
